<compile_context>
chip_gen: v5e
topology: v5e:2x2
jax: 0.10.0
libtpu: 0.0.40
codegen_flags: <defaults>
</compile_context>

<pallas_src>
import functools

import jax
import jax.numpy as jnp
from jax.experimental import pallas as pl
from jax.experimental.pallas import tpu as pltpu


LANE = 128  # lane width: output feature dims padded to a multiple of this


def _round_up(n, m):
    return ((n + m - 1) // m) * m


def _make_fused_mlp_kernel(n_layers):
    """Fused relu(...relu(x @ W1 + b1)... @ Wn + bn).

    Ref order: x, (w1, b1), ..., (wn, bn), out.
    Weights are pre-transposed to (Din, Dout) and lane-padded, so the kernel is
    a straight chain of MXU matmuls + VPU bias/relu with the intermediate
    activation kept on-chip (never written back to HBM).
    """

    def kernel(*refs):
        x_ref = refs[0]
        o_ref = refs[1 + 2 * n_layers]
        h = x_ref[...].astype(jnp.float32)
        for i in range(n_layers):
            w_ref = refs[1 + 2 * i]   # (Din_i, Dout_pad_i), compute dtype
            b_ref = refs[2 + 2 * i]   # (1, Dout_pad_i), f32
            h = jnp.dot(h.astype(w_ref.dtype), w_ref[...],
                        preferred_element_type=jnp.float32)
            h = jnp.maximum(h + b_ref[...], 0.0)   # bias + ReLU in f32 (VPU)
        o_ref[...] = h.astype(o_ref.dtype)

    return kernel


def prepare_params(params, in_features, compute_dtype=jnp.float32):
    """ONE-TIME weight preparation (hoisted out of the per-call path).

    Transposes each (Dout, Din) weight to (Din, Dout) for direct MXU feed,
    pads output widths to lane multiples (zero columns + zero bias so padded
    outputs are exactly relu(0)=0), and pads the next layer's input rows to
    match. The first layer's input dim is left unpadded so x needs no padding.
    """
    prepared = []
    prev = in_features
    for w, b in params:
        dout, din = w.shape
        dout_p = _round_up(dout, LANE)
        wt_p = jnp.zeros((prev, dout_p), compute_dtype)
        wt_p = wt_p.at[:din, :dout].set(w.T.astype(compute_dtype))
        b_p = jnp.zeros((1, dout_p), jnp.float32).at[:, :dout].set(
            b.astype(jnp.float32))
        prepared.append((wt_p, b_p))
        prev = dout_p
    return prepared


@functools.partial(jax.jit, static_argnames=("out_features", "tile_m"))
def encoder_forward(x, prepared, out_features, tile_m=256):
    """Flatten (plain reshape) + fused Linear/ReLU chain in a single Pallas call."""
    B = x.shape[0]
    h = x.reshape(B, -1)                      # nn.Flatten
    din = h.shape[1]
    n_layers = len(prepared)
    dout_p = prepared[-1][0].shape[1]

    flat_params = []
    for wt, b in prepared:
        flat_params.append(wt)
        flat_params.append(b)

    # --- advisory cost estimate ------------------------------------------
    flops = 2 * B * sum(int(wt.shape[0]) * int(wt.shape[1]) for wt, _ in prepared)
    param_bytes = sum(wt.size * wt.dtype.itemsize + b.size * b.dtype.itemsize
                      for wt, b in prepared)
    bytes_accessed = int(h.size * h.dtype.itemsize + param_bytes + B * dout_p * 4)
    cost = pl.CostEstimate(flops=int(flops), transcendentals=0,
                           bytes_accessed=bytes_accessed)

    # --- VMEM budget: resident params (x2 for pipeline buffers) + activation
    # tiles; only raise above the scoped default when needed; clamp to the
    # v7x physical ceiling (64 MiB).
    tile_rows = min(B, tile_m)
    widths = [din] + [int(wt.shape[1]) for wt, _ in prepared]
    act_bytes = tile_rows * (widths[0] + max(widths[1:])) * 4
    need = 2 * param_bytes + 4 * act_bytes + (2 << 20)
    vmem_limit = int(min(64 << 20, need)) if need > (16 << 20) else None

    kernel = _make_fused_mlp_kernel(n_layers)

    if B <= tile_m:
        # Tiny-batch latency path: everything as a single whole-array VMEM block.
        vmem = pl.BlockSpec(memory_space=pltpu.MemorySpace.VMEM)
        out_p = pl.pallas_call(
            kernel,
            out_shape=jax.ShapeDtypeStruct((B, dout_p), jnp.float32),
            in_specs=[vmem] * (1 + len(flat_params)),
            out_specs=vmem,
            cost_estimate=cost,
            compiler_params=pltpu.CompilerParams(vmem_limit_bytes=vmem_limit),
        )(h, *flat_params)
    else:
        # Batch-tiled path: pipeline x/out tiles, keep weights VMEM-resident
        # (same block index across the grid), shard tiles across TCs on v7x.
        grid = (pl.cdiv(B, tile_m),)
        in_specs = [pl.BlockSpec((tile_m, din), lambda i: (i, 0))]
        for wt, b in prepared:
            in_specs.append(pl.BlockSpec(wt.shape, lambda i: (0, 0)))
            in_specs.append(pl.BlockSpec(b.shape, lambda i: (0, 0)))
        out_p = pl.pallas_call(
            kernel,
            out_shape=jax.ShapeDtypeStruct((B, dout_p), jnp.float32),
            grid=grid,
            in_specs=in_specs,
            out_specs=pl.BlockSpec((tile_m, dout_p), lambda i: (i, 0)),
            cost_estimate=cost,
            compiler_params=pltpu.CompilerParams(
                dimension_semantics=("parallel",),
                vmem_limit_bytes=vmem_limit,
            ),
        )(h, *flat_params)

    # Lane slice (fused inside this jit; padded cols are exact zeros).
    return out_p[:, :out_features]


def init_encoder_params(layers, key):
    """Deterministic init matching nn.Linear(layers[i], layers[i+1]) shapes."""
    params = []
    for i in range(len(layers) - 1):
        fan_in, fan_out = layers[i], layers[i + 1]
        key, kw, kb = jax.random.split(key, 3)
        bound = 1.0 / jnp.sqrt(fan_in)
        w = jax.random.uniform(kw, (fan_out, fan_in), jnp.float32,
                               minval=-bound, maxval=bound)
        b = jax.random.uniform(kb, (fan_out,), jnp.float32,
                               minval=-bound, maxval=bound)
        params.append((w, b))
    return params


def encoder_reference(x, params):
    B = x.shape[0]
    h = x.reshape(B, -1)
    for w, b in params:
        h = jnp.maximum(h @ w.T + b, 0.0)
    return h


if __name__ == "__main__":
    key = jax.random.PRNGKey(0)

    # Small shapes consistent with the module's forward:
    # x: (B, C, H, W) = (2, 4, 8, 8) -> flattened dim 256
    B, C, H, W = 2, 4, 8, 8
    layers = [C * H * W, 128, 32]  # MLP widths

    key, kx, kp = jax.random.split(key, 3)
    x = jax.random.normal(kx, (B, C, H, W), jnp.float32)
    params = init_encoder_params(layers, kp)

    # One-time weight prep (transpose + lane pad), cached across forward calls.
    prepared = prepare_params(params, in_features=C * H * W)

    # Small-batch (whole-block) path.
    out = encoder_forward(x, prepared, out_features=layers[-1])
    out = jax.block_until_ready(out)
    ref = encoder_reference(x, params)
    assert out.shape == (B, layers[-1])
    assert jnp.allclose(out, ref, atol=1e-5, rtol=1e-5)

    # Batch-tiled (grid) path with a ragged last tile, same params.
    B2 = 300
    key, kx2 = jax.random.split(key)
    x2 = jax.random.normal(kx2, (B2, C, H, W), jnp.float32)
    out2 = jax.block_until_ready(
        encoder_forward(x2, prepared, out_features=layers[-1]))
    ref2 = encoder_reference(x2, params)
    assert out2.shape == (B2, layers[-1])
    assert jnp.allclose(out2, ref2, atol=1e-5, rtol=1e-5)

    print("KERNEL_OK")
</pallas_src>

<mosaic_0001>
module attributes {stable_mosaic.version = 11 : i64} {
  func.func @kernel(%arg0: memref<2x256xf32, #tpu.memory_space<vmem>>, %arg1: memref<256x128xf32, #tpu.memory_space<vmem>>, %arg2: memref<1x128xf32, #tpu.memory_space<vmem>>, %arg3: memref<128x128xf32, #tpu.memory_space<vmem>>, %arg4: memref<1x128xf32, #tpu.memory_space<vmem>>, %arg5: memref<2x128xf32, #tpu.memory_space<vmem>>) attributes {dimension_semantics = [], scalar_prefetch = 0 : i64, scratch_operands = 0 : i64, tpu.core_type = #tpu.core_type<tc>} {
    %c0 = arith.constant 0 : index
    %c0_0 = arith.constant 0 : index
    %0 = vector.load %arg0[%c0, %c0_0] : memref<2x256xf32, #tpu.memory_space<vmem>>, vector<2x256xf32>
    %c0_1 = arith.constant 0 : index
    %c0_2 = arith.constant 0 : index
    %1 = vector.load %arg1[%c0_1, %c0_2] : memref<256x128xf32, #tpu.memory_space<vmem>>, vector<256x128xf32>
    %cst = arith.constant dense<0.000000e+00> : vector<2x128xf32>
    %2 = tpu.matmul %0, %1, %cst {dimension_numbers = #tpu.dot_dimension_numbers<[1], [0], [0], [1], [0, 0, 1, 1], [], []>} : vector<2x256xf32>, vector<256x128xf32>, vector<2x128xf32> -> vector<2x128xf32>
    %c0_3 = arith.constant 0 : index
    %c0_4 = arith.constant 0 : index
    %3 = vector.load %arg2[%c0_3, %c0_4] : memref<1x128xf32, #tpu.memory_space<vmem>>, vector<1x128xf32>
    %4 = vector.broadcast %3 : vector<1x128xf32> to vector<2x128xf32>
    %5 = arith.addf %2, %4 : vector<2x128xf32>
    %cst_5 = arith.constant 0.000000e+00 : f32
    %6 = vector.broadcast %cst_5 : f32 to vector<2x128xf32>
    %7 = arith.maximumf %5, %6 : vector<2x128xf32>
    %c0_6 = arith.constant 0 : index
    %c0_7 = arith.constant 0 : index
    %8 = vector.load %arg3[%c0_6, %c0_7] : memref<128x128xf32, #tpu.memory_space<vmem>>, vector<128x128xf32>
    %cst_8 = arith.constant dense<0.000000e+00> : vector<2x128xf32>
    %9 = tpu.matmul %7, %8, %cst_8 {dimension_numbers = #tpu.dot_dimension_numbers<[1], [0], [0], [1], [0, 0, 1, 1], [], []>} : vector<2x128xf32>, vector<128x128xf32>, vector<2x128xf32> -> vector<2x128xf32>
    %c0_9 = arith.constant 0 : index
    %c0_10 = arith.constant 0 : index
    %10 = vector.load %arg4[%c0_9, %c0_10] : memref<1x128xf32, #tpu.memory_space<vmem>>, vector<1x128xf32>
    %11 = vector.broadcast %10 : vector<1x128xf32> to vector<2x128xf32>
    %12 = arith.addf %9, %11 : vector<2x128xf32>
    %cst_11 = arith.constant 0.000000e+00 : f32
    %13 = vector.broadcast %cst_11 : f32 to vector<2x128xf32>
    %14 = arith.maximumf %12, %13 : vector<2x128xf32>
    %c0_12 = arith.constant 0 : index
    %c0_13 = arith.constant 0 : index
    %15 = vector.load %arg5[%c0_12, %c0_13] : memref<2x128xf32, #tpu.memory_space<vmem>>, vector<2x128xf32>
    tpu.vector_store %arg5[%c0_12, %c0_13], %14 {strides = array<i32>} : memref<2x128xf32, #tpu.memory_space<vmem>>, vector<2x128xf32>,
    return
  }
}

</mosaic_0001>

<bundles_post_ra>
// kernel: encoder_forward.1
= control target key start
LH: loop header
LB: loop body
LE: loop exit
PB: predicated region body
PF: predicated region fallthrough
CT: control target
= control target key end

     0   :  { %10 = vsyncpa [#allocation3], 0  ;;  %s335_s0 = inlined_call_operand.vmem [shape: f32[2,256], index: 0, kind: input, shape index: {}]   ;;  %s336_s1 = inlined_call_operand.hbm [shape: f32[256,128], index: 1, kind: input, shape index: {}]   ;;  %s337_s2 = inlined_call_operand.vmem [shape: f32[1,128], index: 2, kind: input, shape index: {}]   ;;  %s338_s3 = inlined_call_operand.hbm [shape: f32[128,128], index: 3, kind: input, shape index: {}]   ;;  %s339_s4 = inlined_call_operand.vmem [shape: f32[1,128], index: 4, kind: input, shape index: {}]   ;;  %s340_s5 = inlined_call_operand.hbm [shape: f32[2,128], index: 5, kind: output, shape index: {}]  }
   0x1   :  { %11 = vsyncpa [#allocation6], 0 }
   0x2   :  { %12 = vsyncpa [#allocation4], 0  ;;  %s19_s20 = sshll.u32 %s336_s1, 4  ;;  %s282_s21 = smov [#allocation2]   ;;  %s20_s20 = int_to_ptr.hbm [resolvable:$true] %s19_s20 }
   0x3   :  { %s21_s22 = sshll.u32 %s282_s21, 4  ;;  %s34_s25 = sshll.u32 %s338_s3, 4  ;;  %s22_s22 = int_to_ptr.vmem [resolvable:$true] %s21_s22  ;;  %s35_s25 = int_to_ptr.hbm [resolvable:$true] %s34_s25 }
   0x4   :  { %s283_s26 = smov 128   ;;  %s284_s27 = smov 8  }
   0x5   :  { %27 = dma.hbm_to_vmem [thread:$0]  %s20_s20, 4096, %s22_s22, [#allocation3], %s283_s26, %s283_s26, %s284_s27  }
   0x6   :  { %s285_s28 = smov [#allocation5]  }
   0x7   :  { %s36_s29 = sshll.u32 %s285_s28, 4  ;;  %s37_s29 = int_to_ptr.vmem [resolvable:$true] %s36_s29 }
   0x8   :  { %42 = dma.hbm_to_vmem [thread:$0]  %s35_s25, 2048, %s37_s29, [#allocation6], %s283_s26, %s283_s26, %s284_s27  }
   0x9   :  { %276 = dma.done.wait [#allocation3], 4096  }
   0xa   :  { %277 = vsyncadd [#allocation3], 4294963200 }
   0xb   :  { %278 = dma.done.wait [#allocation6], 2048  }
   0xc   :  { %279 = vsyncadd [#allocation6], 4294965248  ;;  %v69_v0 = vld [vmem:[#allocation2 + $0x78] sm:$0xff]  ;;  %v68_v1 = vld [vmem:[#allocation2 + $0x70] sm:$0xff]  ;;  %s286_s8 = smov [#allocation7]   ;;  %s186_s12 = sshll.u32 %s340_s5, 4  ;;  %s187_s12 = int_to_ptr.hbm [resolvable:$true] %s186_s12 }
   0xd   :  { %v85_v2 = vld [vmem:[#allocation2 + $0xf8] sm:$0xff]  ;;  %96 = vmatpush.msra.mxu0 %v69_v0  ;;  %v84_v3 = vld [vmem:[#allocation2 + $0xf0] sm:$0xff]  ;;  %v67_v4 = vld [vmem:[#allocation2 + $0x68] sm:$0xff]  ;;  %s184_s9 = sshll.u32 %s286_s8, 4  ;;  %s185_s9 = int_to_ptr.vmem [resolvable:$true] %s184_s9 }
   0xe   :  { %116 = vmatpush.msra.mxu1 %v85_v2  ;;  %v83_v5 = vld [vmem:[#allocation2 + $0xe8] sm:$0xff]  ;;  %v66_v6 = vld [vmem:[#allocation2 + $0x60] sm:$0xff]  ;;  %v65_v8 = vld [vmem:[#allocation2 + $0x58] sm:$0xff] }
   0xf   :  { %97 = vmatpush.msra.mxu0 %v68_v1  ;;  %v82_v7 = vld [vmem:[#allocation2 + $0xe0] sm:$0xff]  ;;  %v81_v9 = vld [vmem:[#allocation2 + $0xd8] sm:$0xff]  ;;  %v64_v10 = vld [vmem:[#allocation2 + $0x50] sm:$0xff] }
  0x10   :  { %117 = vmatpush.msra.mxu1 %v84_v3  ;;  %v80_v11 = vld [vmem:[#allocation2 + $0xd0] sm:$0xff]  ;;  %v63_v12 = vld [vmem:[#allocation2 + $0x48] sm:$0xff]  ;;  %v53_v14 = vld [vmem:[%s335_s0] sm:$0xf] }
  0x11   :  { %98 = vmatpush.msra.mxu0 %v67_v4  ;;  %v79_v13 = vld [vmem:[#allocation2 + $0xc8] sm:$0xff]  ;;  %91 = vst [vmem:[#allocation1] ss:$4 sm:$0xff] %v53_v14  ;;  %v152_v15 = vld [vmem:[#allocation5 + $0x78] sm:$0xff]  ;;  %v151_v16 = vld [vmem:[#allocation5 + $0x70] sm:$0xff] }
  0x12   :  { %118 = vmatpush.msra.mxu1 %v83_v5  ;;  %v62_v17 = vld [vmem:[#allocation2 + $0x40] sm:$0xff]  ;;  %157 = vmatpush.msra.mxu2 %v152_v15  ;;  %v150_v19 = vld [vmem:[#allocation5 + $0x68] sm:$0xff]  ;;  %v61_v20 = vld [vmem:[#allocation2 + $0x38] sm:$0xff] }
  0x13   :  { %99 = vmatpush.msra.mxu0 %v66_v6  ;;  %v78_v18 = vld [vmem:[#allocation2 + $0xc0] sm:$0xff]  ;;  %v77_v21 = vld [vmem:[#allocation2 + $0xb8] sm:$0xff]  ;;  %v60_v23 = vld [vmem:[#allocation2 + $0x30] sm:$0xff] }
  0x14   :  { %119 = vmatpush.msra.mxu1 %v82_v7  ;;  %158 = vmatpush.msra.mxu2 %v151_v16  ;;  %v149_v22 = vld [vmem:[#allocation5 + $0x60] sm:$0xff]  ;;  %v76_v24 = vld [vmem:[#allocation2 + $0xb0] sm:$0xff]  ;;  %v148_v25 = vld [vmem:[#allocation5 + $0x58] sm:$0xff] }
  0x15   :  { %100 = vmatpush.msra.mxu0 %v65_v8  ;;  %v59_v26 = vld [vmem:[#allocation2 + $0x28] sm:$0xff]  ;;  %v147_v28 = vld [vmem:[#allocation5 + $0x50] sm:$0xff]  ;;  %v58_v29 = vld [vmem:[#allocation2 + $0x20] sm:$0xff] }
  0x16   :  { %120 = vmatpush.msra.mxu1 %v81_v9  ;;  %159 = vmatpush.msra.mxu2 %v150_v19  ;;  %v75_v27 = vld [vmem:[#allocation2 + $0xa8] sm:$0xff]  ;;  %v74_v30 = vld [vmem:[#allocation2 + $0xa0] sm:$0xff]  ;;  %v57_v32 = vld [vmem:[#allocation2 + $0x18] sm:$0xff] }
  0x17   :  { %101 = vmatpush.msra.mxu0 %v64_v10  ;;  %v146_v31 = vld [vmem:[#allocation5 + $0x48] sm:$0xff]  ;;  %v73_v33 = vld [vmem:[#allocation2 + $0x98] sm:$0xff]  ;;  %v145_v34 = vld [vmem:[#allocation5 + $0x40] sm:$0xff] }
  0x18   :  { %121 = vmatpush.msra.mxu1 %v80_v11  ;;  %160 = vmatpush.msra.mxu2 %v149_v22  ;;  %v56_v35 = vld [vmem:[#allocation2 + $0x10] sm:$0xff]  ;;  %v144_v37 = vld [vmem:[#allocation5 + $0x38] sm:$0xff]  ;;  %v55_v38 = vld [vmem:[#allocation2 + $0x8] sm:$0xff] }
  0x19   :  { %102 = vmatpush.msra.mxu0 %v63_v12  ;;  %v72_v36 = vld [vmem:[#allocation2 + $0x90] sm:$0xff]  ;;  %v71_v39 = vld [vmem:[#allocation2 + $0x88] sm:$0xff]  ;;  %v54_v41 = vld [vmem:[#allocation2] sm:$0xff] }
  0x1a   :  { %122 = vmatpush.msra.mxu1 %v79_v13  ;;  %161 = vmatpush.msra.mxu2 %v148_v25  ;;  %v143_v40 = vld [vmem:[#allocation5 + $0x30] sm:$0xff]  ;;  %v70_v42 = vld [vmem:[#allocation2 + $0x80] sm:$0xff]  ;;  %v92_v43 = vld.sshfl [vmem:[#allocation1] sm:$0xff pattern:$0x73625140] }
  0x1b   :  { %103 = vmatpush.msra.mxu0 %v62_v17  ;;  %v93_v44 = vld.sshfl [vmem:[#allocation1 + $0x8] sm:$0xff pattern:$0x73625140]  ;;  %v142_v45 = vld [vmem:[#allocation5 + $0x28] sm:$0xff]  ;;  %v140_v47 = vld [vmem:[#allocation5 + $0x18] sm:$0xff] }
  0x1c   :  { %123 = vmatpush.msra.mxu1 %v78_v18  ;;  %162 = vmatpush.msra.mxu2 %v147_v28  ;;  %v141_v46 = vld [vmem:[#allocation5 + $0x20] sm:$0xff]  ;;  %v139_v48 = vld [vmem:[#allocation5 + $0x10] sm:$0xff]  ;;  %v138_v49 = vld [vmem:[#allocation5 + $0x8] sm:$0xff] }
  0x1d   :  { %104 = vmatpush.msra.mxu0 %v61_v20  ;;  %v137_v50 = vld [vmem:[#allocation5] sm:$0xff]  ;;  %v202_v51 = vld [vmem:[%s337_s2] ss:$0 sm:$0xff] }
  0x1e   :  { %124 = vmatpush.msra.mxu1 %v77_v21  ;;  %163 = vmatpush.msra.mxu2 %v146_v31  ;;  %v203_v57 = vld [vmem:[%s339_s4] ss:$0 sm:$0xff] }
  0x1f   :  { %105 = vmatpush.msra.mxu0 %v60_v23 }
  0x20   :  { %125 = vmatpush.msra.mxu1 %v76_v24  ;;  %164 = vmatpush.msra.mxu2 %v145_v34 }
  0x21   :  { %106 = vmatpush.msra.mxu0 %v59_v26 }
  0x22   :  { %126 = vmatpush.msra.mxu1 %v75_v27  ;;  %165 = vmatpush.msra.mxu2 %v144_v37 }
  0x23   :  { %107 = vmatpush.msra.mxu0 %v58_v29 }
  0x24   :  { %127 = vmatpush.msra.mxu1 %v74_v30  ;;  %166 = vmatpush.msra.mxu2 %v143_v40 }
  0x25   :  { %108 = vmatpush.msra.mxu0 %v57_v32 }
  0x26   :  { %128 = vmatpush.msra.mxu1 %v73_v33  ;;  %167 = vmatpush.msra.mxu2 %v142_v45 }
  0x27   :  { %109 = vmatpush.msra.mxu0 %v56_v35 }
  0x28   :  { %129 = vmatpush.msra.mxu1 %v72_v36  ;;  %168 = vmatpush.msra.mxu2 %v141_v46 }
  0x29   :  { %110 = vmatpush.msra.mxu0 %v55_v38 }
  0x2a   :  { %130 = vmatpush.msra.mxu1 %v71_v39  ;;  %169 = vmatpush.msra.mxu2 %v140_v47 }
  0x2b   :  { %111 = vmatpush.msra.mxu0 %v54_v41 }
  0x2c   :  { %131 = vmatpush.msra.mxu1 %v70_v42  ;;  %112 = vmatmul.f32.vlgmr.msra.gmra.mxu0 %v92_v43 }
  0x2d   :  { %132 = vmatmul.f32.vlgmr.msra.gmra.mxu1 %v93_v44  ;;  %170 = vmatpush.msra.mxu2 %v139_v48 }
  0x2f   :  { %171 = vmatpush.msra.mxu2 %v138_v49 }
  0x31   :  { %172 = vmatpush.msra.mxu2 %v137_v50 }
  0xa9   :  { %v113_v52 = vpop.f32.mrf.mxu0 }
  0xaa   :  { %v133_v53 = vpop.f32.mrf.mxu1  ;;  %v114_v54 = vadd.f32 %v202_v51, %v113_v52 }
  0xac   :  { %v134_v55 = vadd.f32 %v133_v53, %v114_v54 }
  0xae   :  { %v136_v56 = vmax.f32 %v134_v55, 0.0 }
  0xb0   :  { %173 = vmatmul.f32.vlgmr.msra.gmra.mxu2 %v136_v56 }
 0x133   :  { %v174_v58 = vpop.f32.mrf.mxu2 }
 0x134   :  { %v175_v59 = vadd.f32 %v203_v57, %v174_v58 }
 0x136   :  { %v177_v60 = vmax.f32 %v175_v59, 0.0 }
 0x138   :  { %178 = vst [vmem:[#allocation7] sm:$0x3] %v177_v60 }
 0x139   :  { %189 = dma.vmem_to_hbm [thread:$0]  %s185_s9, 32, %s187_s12, [#allocation4]  }
 0x13a   :  { %280 = dma.done.wait [#allocation4], 32  }
 0x13b   :  { %281 = vsyncadd [#allocation4], 4294967264 }
 0x13c   :  { %194 = vsyncpa [#allocation3], 1 }
 0x13d   :  { %195 = vsyncpa [#allocation6], 1 }
 0x13e   :  { %196 = vsyncpa [#allocation4], 1 }

</bundles_post_ra>
